<compile_context>
chip_gen: v7x
topology: tpu7x:2x2x1
jax: 0.10.0
libtpu: 0.0.40
codegen_flags: <defaults>
</compile_context>

<pallas_src>
from functools import partial

import numpy as np
import jax
import jax.numpy as jnp
from jax.experimental import pallas as pl
from jax.experimental.pallas import tpu as pltpu

NUM_WO_ACTIONS = 6  # wo_action_fc output size (fixed in the module)


def _round_up(x, m):
    return (x + m - 1) // m * m


def asn_kernel(Din, H, E,
               x_ref, h_ref, wa_ref, wb_ref,
               q_ref, hout_ref):
    """Fused ASN forward. All params live in two packed slabs.

    wa_ref  [Din_pad + 2W + H + 4, W]  (W = (1+E)*H):
        rows 0:Din            -> W1_big   (env fc1 | scattered enemy fc1)
        rows Din_pad:+W       -> W2_big   (block-diag env/enemy fc2)
        next H rows           -> rep      (0/1: replicate h_env into enemy groups)
        next W rows           -> WQ       (wo_action_fc | attack-Q selection), lane-padded
        last 4 rows           -> b1_big, b2_big, ones_env, bq_big
    wb_ref  [2W + 2, 3W]:
        rows 0:W              -> W_all    (block-diag GRU input weights, r|z|n)
        rows W:2W             -> U_all    (block-diag GRU hidden weights, r|z|n)
        row 2W                -> gx bias  (bih_r+bhh_r | bih_z+bhh_z | bih_n), block-packed
        row 2W+1 (lanes 0:W)  -> bhh_n    (hidden-side n bias, r-gated)
    """
    W = (1 + E) * H
    Din_pad = _round_up(Din, 8)

    x = x_ref[...]                    # [B, Din]
    h = h_ref[...]                    # [B, W]  (env | enemy0 | ... packed on lanes)

    # ---- static slab-A slices ----
    o_w2 = Din_pad
    o_rep = o_w2 + W
    o_wq = o_rep + H
    o_b = o_wq + W
    w1 = wa_ref[0:Din, :]             # [Din, W]
    w2 = wa_ref[o_w2:o_rep, :]        # [W, W]
    rep = wa_ref[o_rep:o_wq, :]       # [H, W]
    wq = wa_ref[o_wq:o_b, :]          # [W, W]
    b1 = wa_ref[o_b + 0:o_b + 1, :]   # [1, W]
    b2 = wa_ref[o_b + 1:o_b + 2, :]
    ones_env = wa_ref[o_b + 2:o_b + 3, :]
    bq = wa_ref[o_b + 3:o_b + 4, :]

    # ---- static slab-B slices ----
    w_all = wb_ref[0:W, :]            # [W, 3W]
    u_all = wb_ref[W:2 * W, :]        # [W, 3W]
    gx_b = wb_ref[2 * W:2 * W + 1, :]            # [1, 3W]
    bhhn = wb_ref[2 * W + 1:2 * W + 2, 0:W]      # [1, W]

    # ---- fc1 -> relu -> fc2 (env + all enemies, lane-packed) ----
    h1 = jnp.maximum(jnp.dot(x, w1, preferred_element_type=jnp.float32) + b1, 0.0)
    h2 = jnp.dot(h1, w2, preferred_element_type=jnp.float32) + b2          # [B, W]

    # ---- GRUCell (env + enemy weights block-packed, gates fused r|z|n) ----
    gx = jnp.dot(h2, w_all, preferred_element_type=jnp.float32) + gx_b     # [B, 3W]
    gh = jnp.dot(h, u_all, preferred_element_type=jnp.float32)             # [B, 3W]
    r = jax.nn.sigmoid(gx[:, 0:W] + gh[:, 0:W])
    z = jax.nn.sigmoid(gx[:, W:2 * W] + gh[:, W:2 * W])
    n = jnp.tanh(gx[:, 2 * W:3 * W] + r * (gh[:, 2 * W:3 * W] + bhhn))
    h_new = (1.0 - z) * n + z * h                                          # [B, W]

    # hidden_out IS the packed GRU output: one full-vreg store, no concat.
    hout_ref[...] = h_new

    # ---- Q head ----
    # mult[:, 0:H] = 1 ; mult[:, (1+e)H:(2+e)H] = h_env   (via constant rep matmul)
    h_env = h_new[:, 0:H]
    mult = jnp.dot(h_env, rep, preferred_element_type=jnp.float32) + ones_env
    prod = h_new * mult                # env group -> h_env ; enemy groups -> h_env*he_e
    # WQ applies wo_action_fc on the env group and sums each enemy group -> [wo_Q|attack_Q]
    qfull = jnp.dot(prod, wq, preferred_element_type=jnp.float32) + bq     # [B, W]
    q_ref[...] = qfull[:, 0:NUM_WO_ACTIONS + E]


def pack_params(raw_params, *, Din, H, E, Fe, enemies_start):
    """Build the two packed parameter slabs from raw (PyTorch-layout) params."""
    (w1, b1, w2, b2, wq, bq, ewih, ebih, ewhh, ebhh,
     we1, be1, we2, be2, nwih, nbih, nwhh, nbhh) = raw_params
    G = 1 + E
    W = G * H
    Din_pad = _round_up(Din, 8)
    f32 = jnp.float32

    def block_diag(env_m, en_m):
        m = jnp.zeros((W, W), f32)
        m = m.at[0:H, 0:H].set(env_m)
        for g in range(1, G):
            m = m.at[g * H:(g + 1) * H, g * H:(g + 1) * H].set(en_m)
        return m

    def tile_bias(env_b, en_b):       # [1,H],[1,H] -> [1,W]
        return jnp.concatenate([env_b] + [en_b] * E, axis=-1)

    # fc1: env weights in group 0; enemy fc1 rows scattered into its feature slice
    W1_big = jnp.zeros((Din_pad, W), f32)
    W1_big = W1_big.at[0:Din, 0:H].set(w1)
    for e in range(E):
        rs = enemies_start + e * Fe
        W1_big = W1_big.at[rs:rs + Fe, (1 + e) * H:(2 + e) * H].set(we1)

    W2_big = block_diag(w2, we2)

    # GRU gate weights, block-diag per gate, then fused along lanes (r|z|n)
    W_all = jnp.concatenate([block_diag(ewih[g], nwih[g]) for g in range(3)], axis=-1)
    U_all = jnp.concatenate([block_diag(ewhh[g], nwhh[g]) for g in range(3)], axis=-1)

    b1_big = tile_bias(b1, be1)
    b2_big = tile_bias(b2, be2)
    gx_bias = jnp.concatenate(
        [tile_bias(ebih[0] + ebhh[0], nbih[0] + nbhh[0]),   # r (folded)
         tile_bias(ebih[1] + ebhh[1], nbih[1] + nbhh[1]),   # z (folded)
         tile_bias(ebih[2], nbih[2])], axis=-1)             # n (input side)
    bhhn_big = tile_bias(ebhh[2], nbhh[2])                  # n (hidden side, r-gated)

    # rep: replicate h_env into enemy lane groups (env group handled by ones bias)
    eye = jnp.eye(H, dtype=f32)
    rep = jnp.zeros((H, W), f32)
    for g in range(1, G):
        rep = rep.at[:, g * H:(g + 1) * H].set(eye)
    ones_env = jnp.concatenate([jnp.ones((1, H), f32), jnp.zeros((1, W - H), f32)], axis=-1)

    # WQ: env group -> wo_action_fc (cols 0:6); enemy group e -> all-ones into col 6+e
    WQ = jnp.zeros((W, W), f32)
    WQ = WQ.at[0:H, 0:NUM_WO_ACTIONS].set(wq)
    for e in range(E):
        WQ = WQ.at[(1 + e) * H:(2 + e) * H, NUM_WO_ACTIONS + e].set(jnp.ones((H,), f32))
    bq_big = jnp.zeros((1, W), f32).at[:, 0:NUM_WO_ACTIONS].set(bq)

    slab_a = jnp.concatenate(
        [W1_big, W2_big, rep, WQ, b1_big, b2_big, ones_env, bq_big], axis=0)
    slab_b = jnp.concatenate(
        [W_all, U_all, gx_bias,
         jnp.concatenate([bhhn_big, jnp.zeros((1, 2 * W), f32)], axis=-1)], axis=0)
    return slab_a, slab_b


def asn_forward(inputs, hidden_state, slab_a, slab_b, *, Din, H, E):
    B = inputs.shape[0]
    W = (1 + E) * H
    vmem = pl.BlockSpec(memory_space=pltpu.MemorySpace.VMEM)
    out_shapes = (
        jax.ShapeDtypeStruct((B, NUM_WO_ACTIONS + E), jnp.float32),  # q
        jax.ShapeDtypeStruct((B, W), jnp.float32),                   # hidden_out
    )
    return pl.pallas_call(
        partial(asn_kernel, Din, H, E),
        out_shape=out_shapes,
        in_specs=[vmem, vmem, vmem, vmem],
        out_specs=(vmem, vmem),
    )(inputs, hidden_state, slab_a, slab_b)


def init_params(key, Din, H, Fe):
    """Deterministic synthetic params (PyTorch-style uniform fan-in init)."""
    keys = jax.random.split(key, 18)

    def u(k, shape, fan_in):
        bound = 1.0 / np.sqrt(fan_in)
        return jax.random.uniform(k, shape, jnp.float32, -bound, bound)

    w1 = u(keys[0], (Din, H), Din);   b1 = u(keys[1], (1, H), Din)
    w2 = u(keys[2], (H, H), H);       b2 = u(keys[3], (1, H), H)
    wq = u(keys[4], (H, NUM_WO_ACTIONS), H); bq = u(keys[5], (1, NUM_WO_ACTIONS), H)
    ewih = u(keys[6], (3, H, H), H);  ebih = u(keys[7], (3, 1, H), H)
    ewhh = u(keys[8], (3, H, H), H);  ebhh = u(keys[9], (3, 1, H), H)
    we1 = u(keys[10], (Fe, H), Fe);   be1 = u(keys[11], (1, H), Fe)
    we2 = u(keys[12], (H, H), H);     be2 = u(keys[13], (1, H), H)
    nwih = u(keys[14], (3, H, H), H); nbih = u(keys[15], (3, 1, H), H)
    nwhh = u(keys[16], (3, H, H), H); nbhh = u(keys[17], (3, 1, H), H)
    return (w1, b1, w2, b2, wq, bq, ewih, ebih, ewhh, ebhh,
            we1, be1, we2, be2, nwih, nbih, nwhh, nbhh)


def reference_forward(inputs, hidden, raw_params, *, E, H, Fe, enemies_start):
    """Pure-JAX mirror of the PyTorch forward (correctness check)."""
    (w1, b1, w2, b2, wq, bq, ewih, ebih, ewhh, ebhh,
     we1, be1, we2, be2, nwih, nbih, nwhh, nbhh) = raw_params

    def gru(x, h, wih, bih, whh, bhh):
        r = jax.nn.sigmoid(x @ wih[0] + bih[0] + h @ whh[0] + bhh[0])
        z = jax.nn.sigmoid(x @ wih[1] + bih[1] + h @ whh[1] + bhh[1])
        n = jnp.tanh(x @ wih[2] + bih[2] + r * (h @ whh[2] + bhh[2]))
        return (1.0 - z) * n + z * h

    h_env_in = hidden[:, :H]
    hv = jax.nn.relu(inputs @ w1 + b1)
    hv = hv @ w2 + b2
    h_env = gru(hv, h_env_in, ewih, ebih, ewhh, ebhh)
    qwo = h_env @ wq + bq

    q_att, h_en = [], []
    for i in range(E):
        ef = inputs[:, enemies_start + i * Fe: enemies_start + (i + 1) * Fe]
        h_in = hidden[:, (1 + i) * H:(2 + i) * H]
        he = jax.nn.relu(ef @ we1 + be1)
        he = he @ we2 + be2
        he = gru(he, h_in, nwih, nbih, nwhh, nbhh)
        q_att.append(jnp.sum(h_env * he, axis=-1, keepdims=True))
        h_en.append(he)
    q = jnp.concatenate([qwo] + q_att, axis=-1)
    h_out = jnp.concatenate([h_env] + h_en, axis=-1)
    return q, h_out


if __name__ == "__main__":
    # Small shapes consistent with the module.
    B = 8                  # batch (n_agents * batch in the original framework)
    H = 32                 # args.asn_hidden_size
    E = 3                  # args.enemies_num
    Fe = 5                 # args.enemy_feats_size
    move_feats = 4         # args.move_feats_size
    agent_feats = 5        # args.agent_feats_size
    agents_num = 3         # args.agents_num
    # move + enemies + allies + blood + 2 other feats = 4 + 15 + 10 + 1 + 2 = 32
    Din = move_feats + Fe * E + agent_feats * (agents_num - 1) + 1 + 2
    enemies_start = move_feats

    key = jax.random.PRNGKey(0)
    k_par, k_in, k_h = jax.random.split(key, 3)
    raw_params = init_params(k_par, Din, H, Fe)
    slab_a, slab_b = pack_params(raw_params, Din=Din, H=H, E=E, Fe=Fe,
                                 enemies_start=enemies_start)
    inputs = jax.random.normal(k_in, (B, Din), jnp.float32)
    hidden = jax.random.normal(k_h, (B, H * (1 + E)), jnp.float32)

    q, h_out = asn_forward(inputs, hidden, slab_a, slab_b, Din=Din, H=H, E=E)
    jax.block_until_ready((q, h_out))

    q_ref, h_ref = reference_forward(inputs, hidden, raw_params,
                                     E=E, H=H, Fe=Fe, enemies_start=enemies_start)
    assert q.shape == (B, NUM_WO_ACTIONS + E) and h_out.shape == (B, H * (1 + E))
    assert np.allclose(np.asarray(q), np.asarray(q_ref), atol=1e-5, rtol=1e-5)
    assert np.allclose(np.asarray(h_out), np.asarray(h_ref), atol=1e-5, rtol=1e-5)
    print("KERNEL_OK")
</pallas_src>

<mosaic_0001>
module attributes {stable_mosaic.version = 11 : i64} {
  func.func @asn_kernel(%arg0: memref<8x32xf32, #tpu.memory_space<vmem>>, %arg1: memref<8x128xf32, #tpu.memory_space<vmem>>, %arg2: memref<324x128xf32, #tpu.memory_space<vmem>>, %arg3: memref<258x384xf32, #tpu.memory_space<vmem>>, %arg4: memref<8x9xf32, #tpu.memory_space<vmem>>, %arg5: memref<8x128xf32, #tpu.memory_space<vmem>>) attributes {dimension_semantics = [], scalar_prefetch = 0 : i64, scratch_operands = 0 : i64, tpu.core_type = #tpu.core_type<tc>} {
    %c0 = arith.constant 0 : index
    %c0_0 = arith.constant 0 : index
    %0 = vector.load %arg0[%c0, %c0_0] : memref<8x32xf32, #tpu.memory_space<vmem>>, vector<8x32xf32>
    %c0_1 = arith.constant 0 : index
    %c0_2 = arith.constant 0 : index
    %1 = vector.load %arg1[%c0_1, %c0_2] : memref<8x128xf32, #tpu.memory_space<vmem>>, vector<8x128xf32>
    %c0_3 = arith.constant 0 : index
    %c0_4 = arith.constant 0 : index
    %2 = vector.load %arg2[%c0_3, %c0_4] : memref<324x128xf32, #tpu.memory_space<vmem>>, vector<32x128xf32>
    %c32 = arith.constant 32 : index
    %c0_5 = arith.constant 0 : index
    %3 = vector.load %arg2[%c32, %c0_5] : memref<324x128xf32, #tpu.memory_space<vmem>>, vector<128x128xf32>
    %c160 = arith.constant 160 : index
    %c0_6 = arith.constant 0 : index
    %4 = vector.load %arg2[%c160, %c0_6] : memref<324x128xf32, #tpu.memory_space<vmem>>, vector<32x128xf32>
    %c192 = arith.constant 192 : index
    %c0_7 = arith.constant 0 : index
    %5 = vector.load %arg2[%c192, %c0_7] : memref<324x128xf32, #tpu.memory_space<vmem>>, vector<128x128xf32>
    %c320 = arith.constant 320 : index
    %c0_8 = arith.constant 0 : index
    %6 = vector.load %arg2[%c320, %c0_8] : memref<324x128xf32, #tpu.memory_space<vmem>>, vector<1x128xf32>
    %c321 = arith.constant 321 : index
    %c0_9 = arith.constant 0 : index
    %7 = vector.load %arg2[%c321, %c0_9] : memref<324x128xf32, #tpu.memory_space<vmem>>, vector<1x128xf32>
    %c322 = arith.constant 322 : index
    %c0_10 = arith.constant 0 : index
    %8 = vector.load %arg2[%c322, %c0_10] : memref<324x128xf32, #tpu.memory_space<vmem>>, vector<1x128xf32>
    %c323 = arith.constant 323 : index
    %c0_11 = arith.constant 0 : index
    %9 = vector.load %arg2[%c323, %c0_11] : memref<324x128xf32, #tpu.memory_space<vmem>>, vector<1x128xf32>
    %c0_12 = arith.constant 0 : index
    %c0_13 = arith.constant 0 : index
    %10 = vector.load %arg3[%c0_12, %c0_13] : memref<258x384xf32, #tpu.memory_space<vmem>>, vector<128x384xf32>
    %c128 = arith.constant 128 : index
    %c0_14 = arith.constant 0 : index
    %11 = vector.load %arg3[%c128, %c0_14] : memref<258x384xf32, #tpu.memory_space<vmem>>, vector<128x384xf32>
    %c256 = arith.constant 256 : index
    %c0_15 = arith.constant 0 : index
    %12 = vector.load %arg3[%c256, %c0_15] : memref<258x384xf32, #tpu.memory_space<vmem>>, vector<1x384xf32>
    %c257 = arith.constant 257 : index
    %c0_16 = arith.constant 0 : index
    %13 = vector.load %arg3[%c257, %c0_16] : memref<258x384xf32, #tpu.memory_space<vmem>>, vector<1x128xf32>
    %cst = arith.constant dense<0.000000e+00> : vector<8x128xf32>
    %14 = tpu.matmul %0, %2, %cst {dimension_numbers = #tpu.dot_dimension_numbers<[1], [0], [0], [1], [0, 0, 1, 1], [], []>} : vector<8x32xf32>, vector<32x128xf32>, vector<8x128xf32> -> vector<8x128xf32>
    %15 = vector.broadcast %6 : vector<1x128xf32> to vector<8x128xf32>
    %16 = arith.addf %14, %15 : vector<8x128xf32>
    %cst_17 = arith.constant 0.000000e+00 : f32
    %17 = vector.broadcast %cst_17 : f32 to vector<8x128xf32>
    %18 = arith.maximumf %16, %17 : vector<8x128xf32>
    %cst_18 = arith.constant dense<0.000000e+00> : vector<8x128xf32>
    %19 = tpu.matmul %18, %3, %cst_18 {dimension_numbers = #tpu.dot_dimension_numbers<[1], [0], [0], [1], [0, 0, 1, 1], [], []>} : vector<8x128xf32>, vector<128x128xf32>, vector<8x128xf32> -> vector<8x128xf32>
    %20 = vector.broadcast %7 : vector<1x128xf32> to vector<8x128xf32>
    %21 = arith.addf %19, %20 : vector<8x128xf32>
    %cst_19 = arith.constant dense<0.000000e+00> : vector<8x384xf32>
    %22 = tpu.matmul %21, %10, %cst_19 {dimension_numbers = #tpu.dot_dimension_numbers<[1], [0], [0], [1], [0, 0, 1, 1], [], []>} : vector<8x128xf32>, vector<128x384xf32>, vector<8x384xf32> -> vector<8x384xf32>
    %23 = vector.broadcast %12 : vector<1x384xf32> to vector<8x384xf32>
    %24 = arith.addf %22, %23 : vector<8x384xf32>
    %cst_20 = arith.constant dense<0.000000e+00> : vector<8x384xf32>
    %25 = tpu.matmul %1, %11, %cst_20 {dimension_numbers = #tpu.dot_dimension_numbers<[1], [0], [0], [1], [0, 0, 1, 1], [], []>} : vector<8x128xf32>, vector<128x384xf32>, vector<8x384xf32> -> vector<8x384xf32>
    %26 = vector.extract_strided_slice %24 {offsets = [0, 0], sizes = [8, 128], strides = [1, 1]} : vector<8x384xf32> to vector<8x128xf32>
    %27 = vector.extract_strided_slice %25 {offsets = [0, 0], sizes = [8, 128], strides = [1, 1]} : vector<8x384xf32> to vector<8x128xf32>
    %28 = arith.addf %26, %27 : vector<8x128xf32>
    %29 = arith.negf %28 : vector<8x128xf32>
    %30 = math.exp %29 : vector<8x128xf32>
    %cst_21 = arith.constant 1.000000e+00 : f32
    %31 = vector.broadcast %cst_21 : f32 to vector<8x128xf32>
    %32 = arith.addf %31, %30 : vector<8x128xf32>
    %33 = arith.divf %31, %32 : vector<8x128xf32>
    %34 = vector.extract_strided_slice %24 {offsets = [0, 128], sizes = [8, 128], strides = [1, 1]} : vector<8x384xf32> to vector<8x128xf32>
    %35 = vector.extract_strided_slice %25 {offsets = [0, 128], sizes = [8, 128], strides = [1, 1]} : vector<8x384xf32> to vector<8x128xf32>
    %36 = arith.addf %34, %35 : vector<8x128xf32>
    %37 = arith.negf %36 : vector<8x128xf32>
    %38 = math.exp %37 : vector<8x128xf32>
    %cst_22 = arith.constant 1.000000e+00 : f32
    %39 = vector.broadcast %cst_22 : f32 to vector<8x128xf32>
    %40 = arith.addf %39, %38 : vector<8x128xf32>
    %41 = arith.divf %39, %40 : vector<8x128xf32>
    %42 = vector.extract_strided_slice %24 {offsets = [0, 256], sizes = [8, 128], strides = [1, 1]} : vector<8x384xf32> to vector<8x128xf32>
    %43 = vector.extract_strided_slice %25 {offsets = [0, 256], sizes = [8, 128], strides = [1, 1]} : vector<8x384xf32> to vector<8x128xf32>
    %44 = vector.broadcast %13 : vector<1x128xf32> to vector<8x128xf32>
    %45 = arith.addf %43, %44 : vector<8x128xf32>
    %46 = arith.mulf %33, %45 : vector<8x128xf32>
    %47 = arith.addf %42, %46 : vector<8x128xf32>
    %48 = math.tanh %47 : vector<8x128xf32>
    %cst_23 = arith.constant 1.000000e+00 : f32
    %49 = vector.broadcast %cst_23 : f32 to vector<8x128xf32>
    %50 = arith.subf %49, %41 : vector<8x128xf32>
    %51 = arith.mulf %50, %48 : vector<8x128xf32>
    %52 = arith.mulf %41, %1 : vector<8x128xf32>
    %53 = arith.addf %51, %52 : vector<8x128xf32>
    %c0_24 = arith.constant 0 : index
    %c0_25 = arith.constant 0 : index
    %54 = vector.load %arg5[%c0_24, %c0_25] : memref<8x128xf32, #tpu.memory_space<vmem>>, vector<8x128xf32>
    tpu.vector_store %arg5[%c0_24, %c0_25], %53 {strides = array<i32>} : memref<8x128xf32, #tpu.memory_space<vmem>>, vector<8x128xf32>,
    %55 = vector.extract_strided_slice %53 {offsets = [0, 0], sizes = [8, 32], strides = [1, 1]} : vector<8x128xf32> to vector<8x32xf32>
    %cst_26 = arith.constant dense<0.000000e+00> : vector<8x128xf32>
    %56 = tpu.matmul %55, %4, %cst_26 {dimension_numbers = #tpu.dot_dimension_numbers<[1], [0], [0], [1], [0, 0, 1, 1], [], []>} : vector<8x32xf32>, vector<32x128xf32>, vector<8x128xf32> -> vector<8x128xf32>
    %57 = vector.broadcast %8 : vector<1x128xf32> to vector<8x128xf32>
    %58 = arith.addf %56, %57 : vector<8x128xf32>
    %59 = arith.mulf %53, %58 : vector<8x128xf32>
    %cst_27 = arith.constant dense<0.000000e+00> : vector<8x128xf32>
    %60 = tpu.matmul %59, %5, %cst_27 {dimension_numbers = #tpu.dot_dimension_numbers<[1], [0], [0], [1], [0, 0, 1, 1], [], []>} : vector<8x128xf32>, vector<128x128xf32>, vector<8x128xf32> -> vector<8x128xf32>
    %61 = vector.broadcast %9 : vector<1x128xf32> to vector<8x128xf32>
    %62 = arith.addf %60, %61 : vector<8x128xf32>
    %63 = vector.extract_strided_slice %62 {offsets = [0, 0], sizes = [8, 9], strides = [1, 1]} : vector<8x128xf32> to vector<8x9xf32>
    %c0_28 = arith.constant 0 : index
    %c0_29 = arith.constant 0 : index
    %64 = vector.load %arg4[%c0_28, %c0_29] : memref<8x9xf32, #tpu.memory_space<vmem>>, vector<8x9xf32>
    tpu.vector_store %arg4[%c0_28, %c0_29], %63 {strides = array<i32>} : memref<8x9xf32, #tpu.memory_space<vmem>>, vector<8x9xf32>,
    return
  }
}

</mosaic_0001>

<bundles_post_ra>
// kernel: tpu_custom_call.1
= control target key start
LH: loop header
LB: loop body
LE: loop exit
PB: predicated region body
PF: predicated region fallthrough
CT: control target
= control target key end

     0   :  { %11 = vsyncpa [#allocation3], 0  ;;  %s1632_s0 = inlined_call_operand.hbm [shape: f32[8,32], index: 0, kind: input, shape index: {}]   ;;  %s1633_s1 = inlined_call_operand.hbm [shape: f32[8,128], index: 1, kind: input, shape index: {}]   ;;  %s1634_s2 = inlined_call_operand.hbm [shape: f32[324,128], index: 2, kind: input, shape index: {}]   ;;  %s1635_s3 = inlined_call_operand.hbm [shape: f32[258,384], index: 3, kind: input, shape index: {}]   ;;  %s1636_s4 = inlined_call_operand.hbm [shape: f32[8,9], index: 4, kind: output, shape index: {0}]   ;;  %s1637_s5 = inlined_call_operand.hbm [shape: f32[8,128], index: 5, kind: output, shape index: {1}]  }
   0x1   :  { %12 = vsyncpa [#allocation6], 0 }
   0x2   :  { %13 = vsyncpa [#allocation9], 0 }
   0x3   :  { %14 = vsyncpa [#allocation4], 0 }
   0x4   :  { %15 = vsyncpa [#allocation12], 0  ;;  %s1465_s18 = smov [#allocation5]   ;;  %s1466_s20 = smov [#allocation2]  }
   0x5   :  { %s32_s19 = sshll.u32 %s1465_s18, 4  ;;  %s22_s21 = sshll.u32 %s1466_s20, 4  ;;  %s33_s19 = int_to_ptr.vmem [resolvable:$true] %s32_s19  ;;  %s23_s21 = int_to_ptr.vmem [resolvable:$true] %s22_s21 }
   0x6   :  { %s1323_s24 = scalar_lea.hbm %s1633_s1, 128 }
   0x7   :  { %p1324_p0 = scmp.ne.s32.totalorder %s1633_s1, %s1323_s24  ;;  %p1327_p1 = scmp.lt.u32.totalorder %s1323_s24, %s1633_s1 }
   0x9   :  { %p1329_p2 = pnand %p1327_p1, %p1324_p0 }
   0xb   :  { %1332 = shalt.err (!%p1329_p2)
}
   0xc   :  { %s1333_s29 = scalar_lea.vmem %s33_s19, 128  ;;  %p1338_p4 = scmp.lt.s32.totalorder %s33_s19, %s33_s19 }
   0xd   :  { %p1334_p3 = scmp.ne.s32.totalorder %s33_s19, %s1333_s29  ;;  %p1339_p5 = scmp.lt.s32.totalorder %s1333_s29, %s1333_s29 }
   0xf   :  { %p1340_p6 = por %p1339_p5, %p1338_p4 }
  0x11   :  { %p1341_p7 = pnand %p1340_p6, %p1334_p3 }
  0x13   :  { %1344 = shalt.err (!%p1341_p7)
}
  0x14   :  { %35 = dma.hbm_to_vmem [thread:$0]  %s1633_s1, 128, %s33_s19, [#allocation6]  }
  0x15   :  { %s1345_s9 = scalar_lea.hbm %s1632_s0, 128 }
  0x16   :  { %p1346_p8 = scmp.ne.s32.totalorder %s1632_s0, %s1345_s9  ;;  %p1349_p9 = scmp.lt.u32.totalorder %s1345_s9, %s1632_s0 }
  0x18   :  { %p1351_p10 = pnand %p1349_p9, %p1346_p8 }
  0x1a   :  { %1354 = shalt.err (!%p1351_p10)
}
  0x1b   :  { %s1355_s14 = scalar_lea.vmem %s23_s21, 128  ;;  %p1360_p12 = scmp.lt.s32.totalorder %s23_s21, %s23_s21 }
  0x1c   :  { %p1356_p11 = scmp.ne.s32.totalorder %s23_s21, %s1355_s14  ;;  %p1361_p13 = scmp.lt.s32.totalorder %s1355_s14, %s1355_s14 }
  0x1e   :  { %p1362_p0 = por %p1361_p13, %p1360_p12 }
  0x20   :  { %p1363_p1 = pnand %p1362_p0, %p1356_p11 }
  0x22   :  { %1366 = shalt.err (!%p1363_p1)
}
  0x23   :  { %25 = dma.hbm_to_vmem [thread:$0]  %s1632_s0, 128, %s23_s21, [#allocation3]  }
  0x24   :  { %s1467_s16 = smov [#allocation7]   ;;  %s1367_s20 = scalar_lea.hbm %s1634_s2, 5248 }
  0x25   :  { %s41_s17 = sshll.u32 %s1467_s16, 4  ;;  %p1368_p2 = scmp.ne.s32.totalorder %s1634_s2, %s1367_s20  ;;  %s42_s17 = int_to_ptr.vmem [resolvable:$true] %s41_s17 }
  0x26   :  { %p1371_p3 = scmp.lt.u32.totalorder %s1367_s20, %s1634_s2 }
  0x28   :  { %p1373_p4 = pnand %p1371_p3, %p1368_p2 }
  0x2a   :  { %1376 = shalt.err (!%p1373_p4)
}
  0x2b   :  { %s1377_s26 = scalar_lea.vmem %s42_s17, 5248  ;;  %p1382_p6 = scmp.lt.s32.totalorder %s42_s17, %s42_s17 }
  0x2c   :  { %p1378_p5 = scmp.ne.s32.totalorder %s42_s17, %s1377_s26  ;;  %p1383_p7 = scmp.lt.s32.totalorder %s1377_s26, %s1377_s26 }
  0x2e   :  { %p1384_p8 = por %p1383_p7, %p1382_p6 }
  0x30   :  { %p1385_p9 = pnand %p1384_p8, %p1378_p5 }
  0x32   :  { %1388 = shalt.err (!%p1385_p9)
}
  0x33   :  { %s1468_s0 = smov 128   ;;  %s1469_s21 = smov 8  }
  0x34   :  { %47 = dma.hbm_to_vmem [thread:$0]  %s1634_s2, 5248, %s42_s17, [#allocation6], %s1468_s0, %s1468_s0, %s1469_s21  }
  0x35   :  { %s1470_s29 = smov [#allocation8]   ;;  %s1389_s8 = scalar_lea.hbm %s1635_s3, 12672 }
  0x36   :  { %s53_s30 = sshll.u32 %s1470_s29, 4  ;;  %p1390_p10 = scmp.ne.s32.totalorder %s1635_s3, %s1389_s8  ;;  %s54_s30 = int_to_ptr.vmem [resolvable:$true] %s53_s30 }
  0x37   :  { %p1393_p11 = scmp.lt.u32.totalorder %s1389_s8, %s1635_s3 }
  0x39   :  { %p1395_p12 = pnand %p1393_p11, %p1390_p10 }
  0x3b   :  { %1398 = shalt.err (!%p1395_p12)
}
  0x3c   :  { %s1399_s13 = scalar_lea.vmem %s54_s30, 12672  ;;  %p1404_p0 = scmp.lt.s32.totalorder %s54_s30, %s54_s30 }
  0x3d   :  { %p1400_p13 = scmp.ne.s32.totalorder %s54_s30, %s1399_s13  ;;  %p1405_p1 = scmp.lt.s32.totalorder %s1399_s13, %s1399_s13 }
  0x3f   :  { %p1406_p2 = por %p1405_p1, %p1404_p0 }
  0x41   :  { %p1407_p3 = pnand %p1406_p2, %p1400_p13 }
  0x43   :  { %1410 = shalt.err (!%p1407_p3)
}
  0x44   :  { %s1471_s2 = smov 384   ;;  %s1472_s14 = smov 24  }
  0x45   :  { %59 = dma.hbm_to_vmem [thread:$0]  %s1635_s3, 12672, %s54_s30, [#allocation9], %s1471_s2, %s1471_s2, %s1472_s14  }
  0x46   :  { %1455 = dma.done.wait [#allocation3], 128  }
  0x47   :  { %1456 = vsyncadd [#allocation3], 4294967168 }
  0x48   :  { %1457 = dma.done.wait [#allocation6], 5376  }
  0x49   :  { %1458 = vsyncadd [#allocation6], 4294961920 }
  0x4a   :  { %1459 = dma.done.wait [#allocation9], 12672  }
  0x4b   :  { %1460 = vsyncadd [#allocation9], 4294954624  ;;  %v1473_v0 = vmov 0.0|0.0   ;;  %vm1474_vm0 = vmmov 0   ;;  %v1475_v1 = vmov 0.0   ;;  %v74_v2 = vld [vmem:[#allocation7] sm:$0xff] }
  0x4c   :  { %1124 = vmatprep.subr.bf16.mxu1 %v1473_v0  ;;  %970 = vmatprep.mubr.msk.f32.mxu1 %vm1474_vm0, %v1475_v1  ;;  %v75_v3 = vld [vmem:[#allocation7 + $0x8] sm:$0xff]  ;;  %v76_v4 = vld [vmem:[#allocation7 + $0x10] sm:$0xff]  ;;  %v77_v6 = vld [vmem:[#allocation7 + $0x18] sm:$0xff]  ;;  %vm221_vm1 = vcmask 261120   ;;  %s1476_s3 = smov [#allocation11]  }
  0x4d   :  { %450 = vmatprep.mubr.f32.mxu0 %v1475_v1  ;;  %v1125_v5 = vpack.c.bf16 %v75_v3, %v74_v2  ;;  %v1128_v7 = vpack.c.bf16 %v77_v6, %v76_v4  ;;  %v78_v8 = vld [vmem:[#allocation7 + $0x20] sm:$0xff]  ;;  %v79_v9 = vld [vmem:[#allocation7 + $0x28] sm:$0xff]  ;;  %v72_v10 = vld [vmem:[#allocation2] sm:$0xff]  ;;  %s861_s16 = sshll.u32 %s1476_s3, 4  ;;  %s862_s16 = int_to_ptr.vmem [resolvable:$true] %s861_s16 }
  0x4e   :  { %v1131_v11 = vpack.c.bf16 %v79_v9, %v78_v8  ;;  %v80_v12 = vld [vmem:[#allocation7 + $0x30] sm:$0xff]  ;;  %v81_v13 = vld [vmem:[#allocation7 + $0x38] sm:$0xff]  ;;  %v82_v15 = vld [vmem:[#allocation7 + $0x40] sm:$0xff]  ;;  %s1411_s17 = scalar_lea.vmem %s862_s16, 128  ;;  %p1416_p5 = scmp.lt.s32.totalorder %s862_s16, %s862_s16 }
  0x4f   :  { %1126 = vmatpush3.bf16.msra.mxu1 %v1125_v5  ;;  %v1134_v14 = vpack.c.bf16 %v81_v13, %v80_v12  ;;  %v83_v16 = vld [vmem:[#allocation7 + $0x48] sm:$0xff]  ;;  %v84_v18 = vld [vmem:[#allocation7 + $0x50] sm:$0xff]  ;;  %v85_v19 = vld [vmem:[#allocation7 + $0x58] sm:$0xff]  ;;  %p1412_p4 = scmp.ne.s32.totalorder %s862_s16, %s1411_s17  ;;  %p1417_p6 = scmp.lt.s32.totalorder %s1411_s17, %s1411_s17 }
  0x50   :  { %1127 = vmatprep.subr.bf16.mxu1 %v1473_v0  ;;  %v1137_v17 = vpack.c.bf16 %v83_v16, %v82_v15  ;;  %v1140_v20 = vpack.c.bf16 %v85_v19, %v84_v18  ;;  %v86_v21 = vld [vmem:[#allocation7 + $0x60] sm:$0xff]  ;;  %v87_v22 = vld [vmem:[#allocation7 + $0x68] sm:$0xff]  ;;  %v88_v24 = vld [vmem:[#allocation7 + $0x70] sm:$0xff] }
  0x51   :  { %v1143_v23 = vpack.c.bf16 %v87_v22, %v86_v21  ;;  %v89_v25 = vld [vmem:[#allocation7 + $0x78] sm:$0xff]  ;;  %v90_v27 = vld [vmem:[#allocation7 + $0x80] sm:$0xff]  ;;  %v91_v28 = vld [vmem:[#allocation7 + $0x88] sm:$0xff]  ;;  %p1418_p7 = por %p1417_p6, %p1416_p5 }
  0x52   :  { %v1146_v26 = vpack.c.bf16 %v89_v25, %v88_v24  ;;  %v1149_v29 = vpack.c.bf16 %v91_v28, %v90_v27  ;;  %v92_v30 = vld [vmem:[#allocation7 + $0x90] sm:$0xff]  ;;  %v93_v31 = vld [vmem:[#allocation7 + $0x98] sm:$0xff]  ;;  %v122_v34 = vld [vmem:[#allocation8 + $0x20] sm:$0xff] }
  0x53   :  { %1129 = vmatpush3.bf16.msra.mxu1 %v1128_v7  ;;  %v1152_v32 = vpack.c.bf16 %v93_v31, %v92_v30  ;;  %v119_v33 = vld [vmem:[#allocation8 + $0x8] sm:$0xff]  ;;  %v118_v35 = vld [vmem:[#allocation8] sm:$0xff]  ;;  %v121_v37 = vld [vmem:[#allocation8 + $0x18] sm:$0xff]  ;;  %p1419_p8 = pnand %p1418_p7, %p1412_p4 }
  0x54   :  { %1130 = vmatprep.subr.bf16.mxu1 %v1473_v0  ;;  %v1154_v36 = vpack.c.bf16 %v122_v34, %v119_v33  ;;  %v1156_v38 = vpack.c.bf16 %v121_v37, %v118_v35  ;;  %v125_v39 = vld [vmem:[#allocation8 + $0x38] sm:$0xff]  ;;  %v128_v40 = vld [vmem:[#allocation8 + $0x50] sm:$0xff]  ;;  %v127_v43 = vld [vmem:[#allocation8 + $0x48] sm:$0xff] }
  0x55   :  { %v124_v41 = vld [vmem:[#allocation8 + $0x30] sm:$0xff]  ;;  %v1158_v42 = vpack.c.bf16 %v128_v40, %v125_v39  ;;  %v131_v45 = vld [vmem:[#allocation8 + $0x68] sm:$0xff]  ;;  %v134_v46 = vld [vmem:[#allocation8 + $0x80] sm:$0xff] }
  0x56   :  { %971 = vmatmul.mubr.msk.f32.vlgmr.msra.gmra.mrb[0].mxu1 %vm221_vm1, %v72_v10  ;;  %1155 = vmatprep.subr.bf16.mxu0 %v1154_v36  ;;  %v1160_v44 = vpack.c.bf16 %v127_v43, %v124_v41  ;;  %v130_v47 = vld [vmem:[#allocation8 + $0x60] sm:$0xff]  ;;  %v1162_v48 = vpack.c.bf16 %v134_v46, %v131_v45  ;;  %v133_v49 = vld [vmem:[#allocation8 + $0x78] sm:$0xff]  ;;  %v140_v52 = vld [vmem:[#allocation8 + $0xb0] sm:$0xff] }
  0x57   :  { %1132 = vmatpush3.bf16.msra.mxu1 %v1131_v11  ;;  %1005 = vmatprep.mubr.msk.f32.mxu1 %vm1474_vm0, %v1475_v1  ;;  %v1164_v50 = vpack.c.bf16 %v133_v49, %v130_v47  ;;  %v137_v51 = vld [vmem:[#allocation8 + $0x98] sm:$0xff]  ;;  %v136_v53 = vld [vmem:[#allocation8 + $0x90] sm:$0xff]  ;;  %v139_v55 = vld [vmem:[#allocation8 + $0xa8] sm:$0xff] }
  0x58   :  { %1133 = vmatprep.subr.bf16.mxu1 %v1473_v0  ;;  %1157 = vmatpush1.bf16.msra.mxu0 %v1156_v38  ;;  %v1166_v54 = vpack.c.bf16 %v140_v52, %v137_v51  ;;  %v1168_v56 = vpack.c.bf16 %v139_v55, %v136_v53  ;;  %v143_v57 = vld [vmem:[#allocation8 + $0xc8] sm:$0xff]  ;;  %v146_v58 = vld [vmem:[#allocation8 + $0xe0] sm:$0xff]  ;;  %v145_v61 = vld [vmem:[#allocation8 + $0xd8] sm:$0xff] }
  0x59   :  { %1159 = vmatprep.subr.bf16.mxu0 %v1158_v42  ;;  %v142_v59 = vld [vmem:[#allocation8 + $0xc0] sm:$0xff]  ;;  %v1170_v60 = vpack.c.bf16 %v146_v58, %v143_v57  ;;  %v149_v63 = vld [vmem:[#allocation8 + $0xf8] sm:$0xff]  ;;  %v152_v2 = vld [vmem:[#allocation8 + $0x110] sm:$0xff] }
  0x5a   :  { %v1172_v62 = vpack.c.bf16 %v145_v61, %v142_v59  ;;  %v148_v3 = vld [vmem:[#allocation8 + $0xf0] sm:$0xff]  ;;  %v1174_v4 = vpack.c.bf16 %v152_v2, %v149_v63  ;;  %v151_v5 = vld [vmem:[#allocation8 + $0x108] sm:$0xff]  ;;  %v158_v8 = vld [vmem:[#allocation8 + $0x140] sm:$0xff] }
  0x5b   :  { %1135 = vmatpush3.bf16.msra.mxu1 %v1134_v14  ;;  %v1176_v6 = vpack.c.bf16 %v151_v5, %v148_v3  ;;  %v155_v7 = vld [vmem:[#allocation8 + $0x128] sm:$0xff]  ;;  %v154_v9 = vld [vmem:[#allocation8 + $0x120] sm:$0xff]  ;;  %v157_v11 = vld [vmem:[#allocation8 + $0x138] sm:$0xff] }
  0x5c   :  { %1136 = vmatprep.subr.bf16.mxu1 %v1473_v0  ;;  %1161 = vmatpush1.bf16.msra.mxu0 %v1160_v44  ;;  %v1178_v10 = vpack.c.bf16 %v158_v8, %v155_v7  ;;  %v1180_v12 = vpack.c.bf16 %v157_v11, %v154_v9  ;;  %v161_v13 = vld [vmem:[#allocation8 + $0x158] sm:$0xff]  ;;  %v164_v14 = vld [vmem:[#allocation8 + $0x170] sm:$0xff]  ;;  %v123_v21 = vld [vmem:[#allocation8 + $0x28] sm:$0xff] }
  0x5d   :  { %1163 = vmatprep.subr.bf16.mxu0 %v1162_v48  ;;  %v160_v15 = vld [vmem:[#allocation8 + $0x150] sm:$0xff]  ;;  %v1182_v16 = vpack.c.bf16 %v164_v14, %v161_v13  ;;  %v876_v19 = vld [vmem:[#allocation7 + $0x140] ss:$0 sm:$0xff]  ;;  %v126_v27 = vld [vmem:[#allocation8 + $0x40] sm:$0xff] }
  0x5e   :  { %v129_v28 = vld [vmem:[#allocation8 + $0x58] sm:$0xff]  ;;  %v132_v30 = vld [vmem:[#allocation8 + $0x70] sm:$0xff]  ;;  %v135_v31 = vld [vmem:[#allocation8 + $0x88] sm:$0xff] }
  0x5f   :  { %1138 = vmatpush3.bf16.msra.mxu1 %v1137_v17  ;;  %v163_v17 = vld [vmem:[#allocation8 + $0x168] sm:$0xff]  ;;  %v138_v33 = vld [vmem:[#allocation8 + $0xa0] sm:$0xff]  ;;  %v141_v34 = vld [vmem:[#allocation8 + $0xb8] sm:$0xff] }
  0x60   :  { %1139 = vmatprep.subr.bf16.mxu1 %v1473_v0  ;;  %1165 = vmatpush1.bf16.msra.mxu0 %v1164_v50  ;;  %v1184_v18 = vpack.c.bf16 %v163_v17, %v160_v15  ;;  %v1196_v35 = vpack.c.bf16 %v141_v34, %v138_v33  ;;  %v144_v36 = vld [vmem:[#allocation8 + $0xd0] sm:$0xff]  ;;  %v147_v37 = vld [vmem:[#allocation8 + $0xe8] sm:$0xff]  ;;  %v150_v39 = vld [vmem:[#allocation8 + $0x100] sm:$0xff] }
  0x61   :  { %1167 = vmatprep.subr.bf16.mxu0 %v1166_v54  ;;  %v1199_v38 = vpack.c.bf16 %v147_v37, %v144_v36  ;;  %v153_v40 = vld [vmem:[#allocation8 + $0x118] sm:$0xff]  ;;  %v156_v42 = vld [vmem:[#allocation8 + $0x130] sm:$0xff]  ;;  %v159_v43 = vld [vmem:[#allocation8 + $0x148] sm:$0xff] }
  0x62   :  { %v1202_v41 = vpack.c.bf16 %v153_v40, %v150_v39  ;;  %v1205_v44 = vpack.c.bf16 %v159_v43, %v156_v42  ;;  %v162_v45 = vld [vmem:[#allocation8 + $0x160] sm:$0xff]  ;;  %v165_v46 = vld [vmem:[#allocation8 + $0x178] sm:$0xff]  ;;  %v167_v48 = vld [vmem:[#allocation8 + $0x188] sm:$0xff] }
  0x63   :  { %1141 = vmatpush3.bf16.msra.mxu1 %v1140_v20  ;;  %v120_v20 = vld [vmem:[#allocation8 + $0x10] sm:$0xff]  ;;  %v1208_v47 = vpack.c.bf16 %v165_v46, %v162_v45  ;;  %v170_v49 = vld [vmem:[#allocation8 + $0x1a0] sm:$0xff]  ;;  %v169_v52 = vld [vmem:[#allocation8 + $0x198] sm:$0xff] }
  0x64   :  { %1142 = vmatprep.subr.bf16.mxu1 %v1473_v0  ;;  %1169 = vmatpush1.bf16.msra.mxu0 %v1168_v56  ;;  %v1187_v25 = vpack.c.bf16 %v123_v21, %v120_v20  ;;  %v1210_v50 = vpack.c.bf16 %v170_v49, %v167_v48  ;;  %v166_v51 = vld [vmem:[#allocation8 + $0x180] sm:$0xff]  ;;  %v168_v53 = vld [vmem:[#allocation8 + $0x190] sm:$0xff]  ;;  %v171_v54 = vld [vmem:[#allocation8 + $0x1a8] sm:$0xff] }
  0x65   :  { %1171 = vmatprep.subr.bf16.mxu0 %v1170_v60  ;;  %v878_v55 = vld [vmem:[#allocation7 + $0x141] ss:$0 sm:$0xff]  ;;  %v176_v57 = vld [vmem:[#allocation8 + $0x1d0] sm:$0xff]  ;;  %v1212_v59 = vpack.c.bf16 %v169_v52, %v166_v51  ;;  %v1243_v61 = vpack.c.bf16 %v171_v54, %v168_v53  ;;  %v175_v3 = vld [vmem:[#allocation8 + $0x1c8] sm:$0xff] }
  0x66   :  { %v173_v56 = vld [vmem:[#allocation8 + $0x1b8] sm:$0xff]  ;;  %v172_v60 = vld [vmem:[#allocation8 + $0x1b0] sm:$0xff]  ;;  %v182_v7 = vld [vmem:[#allocation8 + $0x200] sm:$0xff] }
  0x67   :  { %1144 = vmatpush3.bf16.msra.mxu1 %v1143_v23  ;;  %v1214_v2 = vpack.c.bf16 %v176_v57, %v173_v56  ;;  %v177_v5 = vld [vmem:[#allocation8 + $0x1d8] sm:$0xff]  ;;  %v1216_v8 = vpack.c.bf16 %v175_v3, %v172_v60  ;;  %v178_v9 = vld [vmem:[#allocation8 + $0x1e0] sm:$0xff]  ;;  %v180_v13 = vld [vmem:[#allocation8 + $0x1f0] sm:$0xff] }
  0x68   :  { %1145 = vmatprep.subr.bf16.mxu1 %v1473_v0  ;;  %1173 = vmatpush1.bf16.msra.mxu0 %v1172_v62  ;;  %v183_v14 = vld [vmem:[#allocation8 + $0x208] sm:$0xff]  ;;  %v185_v15 = vld [vmem:[#allocation8 + $0x218] sm:$0xff]  ;;  %v200_v34 = vld [vmem:[#allocation8 + $0x290] sm:$0xff] }
  0x69   :  { %1175 = vmatprep.subr.bf16.mxu0 %v1174_v4  ;;  %v174_v4 = vld [vmem:[#allocation8 + $0x1c0] sm:$0xff]  ;;  %v187_v21 = vld [vmem:[#allocation8 + $0x228] sm:$0xff]  ;;  %v197_v33 = vld [vmem:[#allocation8 + $0x278] sm:$0xff] }
  0x6a   :  { %v196_v36 = vld [vmem:[#allocation8 + $0x270] sm:$0xff]  ;;  %v199_v39 = vld [vmem:[#allocation8 + $0x288] sm:$0xff]  ;;  %v198_v40 = vld [vmem:[#allocation8 + $0x280] sm:$0xff] }
  0x6b   :  { %1147 = vmatpush3.bf16.msra.mxu1 %v1146_v26  ;;  %v203_v42 = vld [vmem:[#allocation8 + $0x2a8] sm:$0xff]  ;;  %v206_v43 = vld [vmem:[#allocation8 + $0x2c0] sm:$0xff]  ;;  %v205_v48 = vld [vmem:[#allocation8 + $0x2b8] sm:$0xff] }
  0x6c   :  { %1148 = vmatprep.subr.bf16.mxu1 %v1473_v0  ;;  %1177 = vmatpush1.bf16.msra.mxu0 %v1176_v6  ;;  %v179_v6 = vld [vmem:[#allocation8 + $0x1e8] sm:$0xff]  ;;  %v202_v45 = vld [vmem:[#allocation8 + $0x2a0] sm:$0xff]  ;;  %v204_v49 = vld [vmem:[#allocation8 + $0x2b0] sm:$0xff] }
  0x6d   :  { %1179 = vmatprep.subr.bf16.mxu0 %v1178_v10  ;;  %v1246_v10 = vpack.c.bf16 %v177_v5, %v174_v4  ;;  %v1218_v11 = vpack.c.bf16 %v182_v7, %v179_v6  ;;  %v209_v51 = vld [vmem:[#allocation8 + $0x2d8] sm:$0xff]  ;;  %v212_v52 = vld [vmem:[#allocation8 + $0x2f0] sm:$0xff]  ;;  %v1236_v53 = vpack.c.bf16 %v205_v48, %v202_v45  ;;  %v211_v57 = vld [vmem:[#allocation8 + $0x2e8] sm:$0xff] }
  0x6e   :  { %v208_v54 = vld [vmem:[#allocation8 + $0x2d0] sm:$0xff]  ;;  %v1238_v56 = vpack.c.bf16 %v212_v52, %v209_v51  ;;  %v96_v3 = vld [vmem:[#allocation7 + $0xb0] sm:$0xff]  ;;  %v102_v48 = vld [vmem:[#allocation7 + $0xe0] sm:$0xff] }
  0x6f   :  { %1150 = vmatpush3.bf16.msra.mxu1 %v1149_v29  ;;  %v1190_v29 = vpack.c.bf16 %v129_v28, %v126_v27  ;;  %v190_v27 = vld [vmem:[#allocation8 + $0x240] sm:$0xff]  ;;  %v1240_v60 = vpack.c.bf16 %v211_v57, %v208_v54  ;;  %v97_v5 = vld [vmem:[#allocation7 + $0xb8] sm:$0xff]  ;;  %v100_v45 = vld [vmem:[#allocation7 + $0xd0] sm:$0xff] }
  0x70   :  { %1151 = vmatprep.subr.bf16.mxu1 %v1473_v0  ;;  %1181 = vmatpush1.bf16.msra.mxu0 %v1180_v12  ;;  %v181_v12 = vld [vmem:[#allocation8 + $0x1f8] sm:$0xff]  ;;  %v1270_v6 = vpack.c.bf16 %v97_v5, %v96_v3  ;;  %v104_v51 = vld [vmem:[#allocation7 + $0xf0] sm:$0xff]  ;;  %v105_v52 = vld [vmem:[#allocation7 + $0xf8] sm:$0xff] }
  0x71   :  { %1183 = vmatprep.subr.bf16.mxu0 %v1182_v16  ;;  %v188_v16 = vld [vmem:[#allocation8 + $0x230] sm:$0xff]  ;;  %v1220_v17 = vpack.c.bf16 %v181_v12, %v178_v9  ;;  %v371_v9 = vlaneseq  ;;  %v106_v54 = vld [vmem:[#allocation7 + $0x100] sm:$0xff] }
  0x72   :  { %v1222_v20 = vpack.c.bf16 %v188_v16, %v185_v15  ;;  %v215_v12 = vld [vmem:[#allocation8 + $0x300] ss:$8 sm:$0x7]  ;;  %v881_v3 = vld [vmem:[#allocation7 + $0x142] ss:$0 sm:$0xff] }
  0x73   :  { %1153 = vmatpush3.bf16.msra.mxu1 %v1152_v32  ;;  %v1193_v32 = vpack.c.bf16 %v135_v31, %v132_v30  ;;  %v193_v30 = vld [vmem:[#allocation8 + $0x258] sm:$0xff]  ;;  %v192_v31 = vld [vmem:[#allocation8 + $0x250] sm:$0xff] }
  0x74   :  { %1186 = vmatprep.subr.bf16.mxu1 %v1473_v0  ;;  %1185 = vmatpush1.bf16.msra.mxu0 %v1184_v18  ;;  %v184_v18 = vld [vmem:[#allocation8 + $0x210] sm:$0xff] }
  0x75   :  { %1211 = vmatprep.subr.bf16.mxu0 %v1210_v50  ;;  %v207_v50 = vld [vmem:[#allocation8 + $0x2c8] sm:$0xff]  ;;  %v109_v57 = vld [vmem:[#allocation7 + $0x118] sm:$0xff] }
 0x129   :  { %v291_v22 = vpop.f32.mrb[0].mxu1 }
 0x12a   :  { %v292_v23 = vadd.f32 %v876_v19, %v291_v22  ;;  %v972_v24 = vpop.f32.mrb[1].mxu1  ;;  %v1249_v19 = vpack.c.bf16 %v183_v14, %v180_v13  ;;  %v186_v22 = vld [vmem:[#allocation8 + $0x220] sm:$0xff] }
 0x12b   :  { %v191_v24 = vld [vmem:[#allocation8 + $0x248] sm:$0xff] }
 0x12c   :  { %v295_v26 = vmax.f32 %v292_v23, 0.0  ;;  %v189_v23 = vld [vmem:[#allocation8 + $0x238] sm:$0xff] }
 0x12d   :  { %v1252_v28 = vpack.c.bf16 %v189_v23, %v186_v22 }
 0x12e   :  { %1006 = vmatmul.mubr.f32.vlgmr.msra.gmra.mrb[2].mxu1 %v295_v26  ;;  %v1224_v26 = vpack.c.bf16 %v187_v21, %v184_v18 }
 0x12f   :  { %1188 = vmatpush3.bf16.msra.mxu1 %v1187_v25  ;;  %1040 = vmatprep.mubr.msk.f32.mxu1 %vm1474_vm0, %v1475_v1  ;;  %v194_v25 = vld [vmem:[#allocation8 + $0x260] sm:$0xff] }
 0x130   :  { %1189 = vmatprep.subr.bf16.mxu1 %v1473_v0 }
 0x133   :  { %1191 = vmatpush3.bf16.msra.mxu1 %v1190_v29  ;;  %v1226_v29 = vpack.c.bf16 %v194_v25, %v191_v24 }
 0x134   :  { %1192 = vmatprep.subr.bf16.mxu1 %v1473_v0 }
 0x137   :  { %1194 = vmatpush3.bf16.msra.mxu1 %v1193_v32  ;;  %v195_v32 = vld [vmem:[#allocation8 + $0x268] sm:$0xff] }
 0x138   :  { %1195 = vmatprep.subr.bf16.mxu1 %v1473_v0  ;;  %v1255_v37 = vpack.c.bf16 %v195_v32, %v192_v31 }
 0x13b   :  { %1197 = vmatpush3.bf16.msra.mxu1 %v1196_v35  ;;  %v1228_v35 = vpack.c.bf16 %v193_v30, %v190_v27 }
 0x13c   :  { %1198 = vmatprep.subr.bf16.mxu1 %v1473_v0 }
 0x13f   :  { %1200 = vmatpush3.bf16.msra.mxu1 %v1199_v38  ;;  %v1230_v38 = vpack.c.bf16 %v200_v34, %v197_v33 }
 0x140   :  { %1201 = vmatprep.subr.bf16.mxu1 %v1473_v0 }
 0x143   :  { %1203 = vmatpush3.bf16.msra.mxu1 %v1202_v41  ;;  %v201_v41 = vld [vmem:[#allocation8 + $0x298] sm:$0xff] }
 0x144   :  { %1204 = vmatprep.subr.bf16.mxu1 %v1473_v0  ;;  %v1258_v46 = vpack.c.bf16 %v201_v41, %v198_v40 }
 0x147   :  { %1206 = vmatpush3.bf16.msra.mxu1 %v1205_v44  ;;  %v1232_v44 = vpack.c.bf16 %v199_v39, %v196_v36  ;;  %v99_v39 = vld [vmem:[#allocation7 + $0xc8] sm:$0xff] }
 0x148   :  { %1207 = vmatprep.subr.bf16.mxu1 %v1473_v0 }
 0x14b   :  { %1209 = vmatpush3.bf16.msra.mxu1 %v1208_v47  ;;  %v1234_v47 = vpack.c.bf16 %v206_v43, %v203_v42 }
 0x14c   :  { %1242 = vmatprep.subr.bf16.mxu1 %v1473_v0 }
 0x201   :  { %v366_v58 = vpop.f32.mrb[2].mxu1 }
 0x202   :  { %v367_v62 = vadd.f32 %v878_v55, %v366_v58  ;;  %v1007_v63 = vpop.f32.mrb[3].mxu1  ;;  %v1261_v55 = vpack.c.bf16 %v207_v50, %v204_v49  ;;  %v210_v58 = vld [vmem:[#allocation8 + $0x2e0] sm:$0xff] }
 0x203   :  { %v94_v63 = vld [vmem:[#allocation7 + $0xa0] sm:$0xff]  ;;  %v103_v49 = vld [vmem:[#allocation7 + $0xe8] sm:$0xff] }
 0x204   :  { %451 = vmatmul.mubr.f32.vlgmr.msra.gmra.mrb[0].mxu0 %v367_v62  ;;  %1041 = vmatmul.mubr.f32.vlgmr.msra.gmra.mrb[4].mxu1 %v367_v62  ;;  %v73_v62 = vld [vmem:[#allocation5] sm:$0xff]  ;;  %v1279_v50 = vpack.c.bf16 %v103_v49, %v102_v48 }
 0x205   :  { %1213 = vmatpush1.bf16.msra.mxu0 %v1212_v59  ;;  %1244 = vmatpush3.bf16.msra.mxu1 %v1243_v61  ;;  %v213_v59 = vld [vmem:[#allocation8 + $0x2f8] sm:$0xff] }
 0x206   :  { %1215 = vmatprep.subr.bf16.mxu0 %v1214_v2  ;;  %1245 = vmatprep.subr.bf16.mxu1 %v1473_v0  ;;  %v1264_v61 = vpack.c.bf16 %v213_v59, %v210_v58  ;;  %v95_v2 = vld [vmem:[#allocation7 + $0xa8] sm:$0xff]  ;;  %v110_v59 = vld [vmem:[#allocation7 + $0x120] sm:$0xff] }
 0x207   :  { %591 = vmatprep.mubr.f32.mxu0 %v1475_v1  ;;  %1075 = vmatprep.mubr.msk.f32.mxu1 %vm1474_vm0, %v1475_v1  ;;  %v1267_v4 = vpack.c.bf16 %v95_v2, %v94_v63  ;;  %v113_v63 = vld [vmem:[#allocation7 + $0x138] sm:$0xff] }
 0x209   :  { %1217 = vmatpush1.bf16.msra.mxu0 %v1216_v8  ;;  %1247 = vmatpush3.bf16.msra.mxu1 %v1246_v10  ;;  %v372_v10 = vshrl.u32 %v371_v9, 7 }
 0x20a   :  { %1219 = vmatprep.subr.bf16.mxu0 %v1218_v11  ;;  %1248 = vmatprep.subr.bf16.mxu1 %v1473_v0 }
 0x20b   :  { %v373_v11 = vsub.s32 0, %v372_v10  ;;  %v377_v13 = vsub.s32 1, %v372_v10 }
 0x20d   :  { %1221 = vmatpush1.bf16.msra.mxu0 %v1220_v17  ;;  %1250 = vmatpush3.bf16.msra.mxu1 %v1249_v19  ;;  %v374_v14 = vrot.slane %v215_v12, %v373_v11  ;;  %v378_v16 = vrot.slane %v215_v12, %v377_v13 }
 0x20e   :  { %1223 = vmatprep.subr.bf16.mxu0 %v1222_v20  ;;  %1251 = vmatprep.subr.bf16.mxu1 %v1473_v0 }
 0x211   :  { %1225 = vmatpush1.bf16.msra.mxu0 %v1224_v26  ;;  %1253 = vmatpush3.bf16.msra.mxu1 %v1252_v28  ;;  %v381_v26 = vsub.s32 2, %v372_v10  ;;  %v216_v28 = vld [vmem:[#allocation8 + $0x301] ss:$0 sm:$0xff] }
 0x212   :  { %1227 = vmatprep.subr.bf16.mxu0 %v1226_v29  ;;  %1254 = vmatprep.subr.bf16.mxu1 %v1473_v0 }
 0x213   :  { %v382_v29 = vrot.slane %v215_v12, %v381_v26 }
 0x215   :  { %1229 = vmatpush1.bf16.msra.mxu0 %v1228_v35  ;;  %1256 = vmatpush3.bf16.msra.mxu1 %v1255_v37 }
 0x216   :  { %1231 = vmatprep.subr.bf16.mxu0 %v1230_v38  ;;  %1257 = vmatprep.subr.bf16.mxu1 %v1473_v0  ;;  %v98_v38 = vld [vmem:[#allocation7 + $0xc0] sm:$0xff] }
 0x217   :  { %v1273_v43 = vpack.c.bf16 %v99_v39, %v98_v38 }
 0x219   :  { %1233 = vmatpush1.bf16.msra.mxu0 %v1232_v44  ;;  %1259 = vmatpush3.bf16.msra.mxu1 %v1258_v46  ;;  %v101_v46 = vld [vmem:[#allocation7 + $0xd8] sm:$0xff] }
 0x21a   :  { %1235 = vmatprep.subr.bf16.mxu0 %v1234_v47  ;;  %1260 = vmatprep.subr.bf16.mxu1 %v1473_v0  ;;  %v1276_v47 = vpack.c.bf16 %v101_v46, %v100_v45 }
 0x21d   :  { %1237 = vmatpush1.bf16.msra.mxu0 %v1236_v53  ;;  %1262 = vmatpush3.bf16.msra.mxu1 %v1261_v55  ;;  %v1282_v53 = vpack.c.bf16 %v105_v52, %v104_v51  ;;  %v107_v55 = vld [vmem:[#allocation7 + $0x108] sm:$0xff] }
 0x21e   :  { %1239 = vmatprep.subr.bf16.mxu0 %v1238_v56  ;;  %1263 = vmatprep.subr.bf16.mxu1 %v1473_v0  ;;  %v1285_v56 = vpack.c.bf16 %v107_v55, %v106_v54 }
 0x221   :  { %1241 = vmatpush1.bf16.msra.mxu0 %v1240_v60  ;;  %1265 = vmatpush3.bf16.msra.mxu1 %v1264_v61  ;;  %v111_v60 = vld [vmem:[#allocation7 + $0x128] sm:$0xff] }
 0x222   :  { %1266 = vmatprep.subr.bf16.mxu0 %v1473_v0  ;;  %v1291_v61 = vpack.c.bf16 %v111_v60, %v110_v59 }
 0x224   :  { %592 = vmatmul.mubr.f32.vlgmr.msra.gmra.mrb[0].mxu0 %v73_v62  ;;  %1076 = vmatmul.mubr.f32.vlgmr.msra.gmra.mrb[6].mxu1 %v73_v62 }
 0x225   :  { %1086 = vmatprep.mubr.msk.f32.mxu0 %vm1474_vm0, %v1475_v1  ;;  %1268 = vmatpush3.bf16.msra.mxu0 %v1267_v4 }
 0x226   :  { %1269 = vmatprep.subr.bf16.mxu0 %v1473_v0 }
 0x229   :  { %1271 = vmatpush3.bf16.msra.mxu0 %v1270_v6 }
 0x22a   :  { %1272 = vmatprep.subr.bf16.mxu0 %v1473_v0 }
 0x2d7   :  { %v523_v7 = vpop.f32.mrb[4].mxu1 }
 0x2d8   :  { %v1042_v8 = vpop.f32.mrb[5].mxu1  ;;  %v524_v33 = vadd.f32 %v523_v7, %v382_v29 }
 0x2f7   :  { %v593_v15 = vpop.f32.mrb[0].mxu0  ;;  %v664_v17 = vpop.f32.mrb[6].mxu1 }
 0x2f8   :  { %v1296_v18 = vadd.f32 %v593_v15, %v374_v14  ;;  %v595_v19 = vpop.f32.mrb[1].mxu0  ;;  %v1077_v20 = vpop.f32.mrb[7].mxu1  ;;  %v682_v31 = vadd.f32 %v664_v17, %v216_v28 }
 0x2f9   :  { %v1297_v22 = vadd.f32 %v595_v19, %v378_v16 }
 0x2fa   :  { %v879_v21 = vmul.f32 -1.442695, %v1296_v18 }
 0x2fb   :  { %v880_v23 = vmul.f32 -1.442695, %v1297_v22 }
 0x2fc   :  { %1313 = vpow2.f32 %v879_v21 }
 0x2fd   :  { %1315 = vpow2.f32 %v880_v23 }
 0x306   :  { %v1314_v24 = vpop.eup %1313 }
 0x307   :  { %v672_v25 = vadd.f32 1.0, %v1314_v24  ;;  %v1316_v27 = vpop.eup %1315 }
 0x308   :  { %v679_v30 = vadd.f32 1.0, %v1316_v27 }
 0x309   :  { %1317 = vrcp.f32 %v672_v25 }
 0x30a   :  { %1319 = vrcp.f32 %v679_v30 }
 0x313   :  { %v1318_v32 = vpop.eup %1317 }
 0x314   :  { %v683_v34 = vmul.f32 %v1318_v32, %v682_v31  ;;  %v1320_v36 = vpop.eup %1319 }
 0x315   :  { %v686_v37 = vsub.f32 1.0, %v1320_v36  ;;  %v688_v42 = vmul.f32 %v1320_v36, %v73_v62  ;;  %v112_v62 = vld [vmem:[#allocation7 + $0x130] sm:$0xff] }
 0x316   :  { %v684_v35 = vadd.f32 %v683_v34, %v524_v33  ;;  %v1294_v2 = vpack.c.bf16 %v113_v63, %v112_v62 }
 0x318   :  { %1321 = vtanh.f32 %v684_v35 }
 0x322   :  { %v1322_v40 = vpop.eup %1321 }
 0x323   :  { %v687_v41 = vmul.f32 %v1322_v40, %v686_v37 }
 0x325   :  { %v689_v44 = vadd.f32 %v688_v42, %v687_v41 }
 0x327   :  { %1087 = vmatmul.mubr.msk.f32.vlgmr.msra.gmra.mrb[2].mxu0 %vm221_vm1, %v689_v44  ;;  %690 = vst [vmem:[#allocation11] sm:$0xff] %v689_v44 }
 0x328   :  { %1274 = vmatpush3.bf16.msra.mxu0 %v1273_v43  ;;  %1121 = vmatprep.mubr.msk.f32.mxu0 %vm1474_vm0, %v1475_v1  ;;  %v108_v1 = vld [vmem:[#allocation7 + $0x110] sm:$0xff] }
 0x329   :  { %1275 = vmatprep.subr.bf16.mxu0 %v1473_v0  ;;  %v1288_v58 = vpack.c.bf16 %v109_v57, %v108_v1 }
 0x32c   :  { %1277 = vmatpush3.bf16.msra.mxu0 %v1276_v47 }
 0x32d   :  { %1278 = vmatprep.subr.bf16.mxu0 %v1473_v0 }
 0x330   :  { %1280 = vmatpush3.bf16.msra.mxu0 %v1279_v50 }
 0x331   :  { %1281 = vmatprep.subr.bf16.mxu0 %v1473_v0 }
 0x334   :  { %1283 = vmatpush3.bf16.msra.mxu0 %v1282_v53 }
 0x335   :  { %1284 = vmatprep.subr.bf16.mxu0 %v1473_v0 }
 0x338   :  { %1286 = vmatpush3.bf16.msra.mxu0 %v1285_v56 }
 0x339   :  { %1287 = vmatprep.subr.bf16.mxu0 %v1473_v0 }
 0x33c   :  { %1289 = vmatpush3.bf16.msra.mxu0 %v1288_v58 }
 0x33d   :  { %1290 = vmatprep.subr.bf16.mxu0 %v1473_v0 }
 0x340   :  { %1292 = vmatpush3.bf16.msra.mxu0 %v1291_v61 }
 0x341   :  { %1293 = vmatprep.subr.bf16.mxu0 %v1473_v0 }
 0x344   :  { %1295 = vmatpush3.bf16.msra.mxu0 %v1294_v2 }
 0x3fa   :  { %v764_v4 = vpop.f32.mrb[2].mxu0 }
 0x3fb   :  { %v765_v5 = vadd.f32 %v881_v3, %v764_v4  ;;  %v1088_v6 = vpop.f32.mrb[3].mxu0 }
 0x3fd   :  { %v768_v7 = vmul.f32 %v765_v5, %v689_v44 }
 0x3ff   :  { %1122 = vmatmul.mubr.f32.vlgmr.msra.gmra.mrb[4].mxu0 %v768_v7 }
 0x400   :  { %1422 = shalt.err (!%p1419_p8)
}
 0x401   :  { %s1423_s20 = scalar_lea.hbm %s1637_s5, 128 }
 0x402   :  { %p1424_p9 = scmp.ne.s32.totalorder %s1637_s5, %s1423_s20  ;;  %p1427_p10 = scmp.lt.u32.totalorder %s1423_s20, %s1637_s5 }
 0x404   :  { %p1429_p11 = pnand %p1427_p10, %p1424_p9 }
 0x406   :  { %1432 = shalt.err (!%p1429_p11)
}
 0x407   :  { %864 = dma.vmem_to_hbm [thread:$0]  %s862_s16, 128, %s1637_s5, [#allocation12]   ;;  %v883_v0 = vld [vmem:[#allocation7 + $0x143] ss:$0 sm:$0xff]  ;;  %vm843_vm2 = vcmask 72704  }
 0x408   :  { %s1477_s21 = smov [#allocation10]  }
 0x409   :  { %s851_s27 = sshll.u32 %s1477_s21, 4  ;;  %s852_s27 = int_to_ptr.vmem [resolvable:$true] %s851_s27 }
 0x40a   :  { %s1433_s28 = scalar_lea.vmem %s852_s27, 128  ;;  %p1438_p13 = scmp.lt.s32.totalorder %s852_s27, %s852_s27 }
 0x40b   :  { %p1434_p12 = scmp.ne.s32.totalorder %s852_s27, %s1433_s28  ;;  %p1439_p0 = scmp.lt.s32.totalorder %s1433_s28, %s1433_s28 }
 0x40d   :  { %p1440_p1 = por %p1439_p0, %p1438_p13 }
 0x40f   :  { %p1441_p2 = pnand %p1440_p1, %p1434_p12 }
 0x4d2   :  { %v839_v8 = vpop.f32.mrb[4].mxu0 }
 0x4d3   :  { %v840_v9 = vadd.f32 %v883_v0, %v839_v8  ;;  %v1123_v10 = vpop.f32.mrb[5].mxu0 }
 0x4d5   :  { %844 = vst.msk [vmem:[#allocation10] sm:$0xff] %vm843_vm2, %v840_v9 }
 0x4d6   :  { %1444 = shalt.err (!%p1441_p2)
}
 0x4d7   :  { %s1445_s5 = scalar_lea.hbm %s1636_s4, 128 }
 0x4d8   :  { %p1446_p3 = scmp.ne.s32.totalorder %s1636_s4, %s1445_s5  ;;  %p1449_p4 = scmp.lt.u32.totalorder %s1445_s5, %s1636_s4 }
 0x4da   :  { %p1451_p5 = pnand %p1449_p4, %p1446_p3 }
 0x4dc   :  { %1454 = shalt.err (!%p1451_p5)
}
 0x4dd   :  { %854 = dma.vmem_to_hbm [thread:$0]  %s852_s27, 128, %s1636_s4, [#allocation4]  }
 0x4de   :  { %1461 = dma.done.wait [#allocation4], 128  }
 0x4df   :  { %1462 = vsyncadd [#allocation4], 4294967168 }
 0x4e0   :  { %1463 = dma.done.wait [#allocation12], 128  }
 0x4e1   :  { %1464 = vsyncadd [#allocation12], 4294967168 }
 0x4e2   :  { %871 = vsyncpa [#allocation3], 1 }
 0x4e3   :  { %872 = vsyncpa [#allocation6], 1 }
 0x4e4   :  { %873 = vsyncpa [#allocation9], 1 }
 0x4e5   :  { %874 = vsyncpa [#allocation4], 1 }
 0x4e6   :  { %875 = vsyncpa [#allocation12], 1 }

</bundles_post_ra>
